<compile_context>
chip_gen: v7x
topology: tpu7x:2x2x1
jax: 0.10.0
libtpu: 0.0.40
codegen_flags: <defaults>
</compile_context>

<pallas_src>
import functools

import jax
import jax.numpy as jnp
from jax.experimental import pallas as pl
from jax.experimental.pallas import tpu as pltpu


_GELU_C1 = 0.7978845608028654            # sqrt(2/pi)
_GELU_C2 = 0.7978845608028654 * 0.044715  # sqrt(2/pi) * 0.044715


# ---------------------------------------------------------------------------
# Fused MLP kernel.
# grid = (row_tiles, hidden_chunks); hidden axis is a reduction into acc_ref.
# ---------------------------------------------------------------------------
def _ffn_kernel(x_ref, w1t_ref, b1_ref, w2t_ref, b2_ref, o_ref, acc_ref, *,
                gelu_dtype):
    k = pl.program_id(1)

    @pl.when(k == 0)
    def _():
        acc_ref[...] = jnp.zeros_like(acc_ref)

    x = x_ref[...]                                            # (tm, E)

    # h = x @ W1^T[:, chunk] + b1[chunk]   (f32 accumulation on the MXU)
    h = jnp.dot(x, w1t_ref[...], preferred_element_type=jnp.float32)
    h = (h + b1_ref[...].astype(jnp.float32)).astype(gelu_dtype)   # (tm, Hk)

    # GELU, tanh approximation, reduced VALU op count (~6 ops/elem):
    #   gelu(h) = 0.5*h + 0.5*h * tanh(h*(c1 + c2*h^2))
    # TODO(synk): torch nn.GELU() default is the exact erf form; the tanh
    # approximation (max abs deviation ~1e-3) keeps the transcendental on EUP.
    u = h * h
    arg = h * (_GELU_C1 + _GELU_C2 * u)
    g = 0.5 * h
    h = g + g * jnp.tanh(arg)

    # acc += gelu(h) @ W2^T[chunk, :]   (operands in activation dtype for MXU)
    acc_ref[...] += jnp.dot(h.astype(x.dtype), w2t_ref[...],
                            preferred_element_type=jnp.float32)

    @pl.when(k == pl.num_programs(1) - 1)
    def _():
        y = acc_ref[...] + b2_ref[...].astype(jnp.float32)
        o_ref[...] = y.astype(o_ref.dtype)


# ---------------------------------------------------------------------------
# Tiling / VMEM budget helpers (all trace-time Python ints).
# ---------------------------------------------------------------------------
def _device_vmem_bytes():
    try:
        return int(pltpu.get_tpu_info().vmem_capacity_bytes)
    except Exception:
        return 64 * 2**20      # conservative fallback == v7x per-TC capacity


def _round_up(v, m):
    return ((v + m - 1) // m) * m


def _pick_row_tile(n_rows, target, align):
    """Row tile: multiple of `align`, <= target, and >=2 grid steps if possible."""
    tm = max(align, (min(target, n_rows) // align) * align)
    if n_rows >= 2 * align and pl.cdiv(n_rows, tm) < 2:
        tm = _round_up((n_rows + 1) // 2, align)     # split rows across 2 TCs
    return tm


def _ffn_vmem_bytes(E, hk, tm, x_bytes, w_bytes, n_wbuf):
    """Conservative working-set estimate for one pipeline step."""
    xio = 4 * tm * E * x_bytes                        # double-buffered x + out tiles
    weights = n_wbuf * hk * (2 * E * w_bytes + 4)     # W1^T + W2^T chunks + b1 chunk
    acc = tm * E * 4 + E * 4                          # f32 accumulator scratch + b2
    hidden = 4 * tm * hk * 4                          # f32 GELU temporaries + cast copy
    return xio + weights + acc + hidden


def _pick_hidden_tile(E, H, tm, x_bytes, w_bytes, budget):
    """Full hidden residence if it fits; else stream H in 128-multiple chunks."""
    if _ffn_vmem_bytes(E, H, tm, x_bytes, w_bytes, n_wbuf=1) <= budget:
        return H
    divisors = [d for d in range(128, H, 128) if H % d == 0]
    for hk in sorted(divisors, reverse=True):
        if _ffn_vmem_bytes(E, hk, tm, x_bytes, w_bytes, n_wbuf=2) <= budget:
            return hk
    return divisors[0] if divisors else H


# ---------------------------------------------------------------------------
# One-time parameter prep (hoisted out of the forward: no per-call transpose).
# ---------------------------------------------------------------------------
def prepare_ffn_params(w1, b1, w2, b2, *, compute_dtype=None):
    """w1: (4E, E), b1: (4E,), w2: (E, 4E), b2: (E,). Do this ONCE at setup."""
    w_dtype = compute_dtype if compute_dtype is not None else w1.dtype
    return dict(
        w1t=w1.T.astype(w_dtype),        # lane-dense (E, 4E)
        b1=b1.reshape(1, -1),
        w2t=w2.T.astype(w_dtype),        # lane-dense (4E, E)
        b2=b2.reshape(1, -1),
    )


# ---------------------------------------------------------------------------
# Forward wrapper.
# ---------------------------------------------------------------------------
def pallas_feed_forward(x, params, *, block_rows=None, block_hidden=None,
                        compute_dtype=None, gelu_in_bf16=None,
                        vmem_budget_frac=0.8):
    """x: (B, T, E); params from prepare_ffn_params()."""
    # TODO(synk): nn.Dropout(p=0.0) is identity in the forward pass; no Pallas
    # RNG dropout is emitted.
    w1t, b1, w2t, b2 = params["w1t"], params["b1"], params["w2t"], params["b2"]
    B, T, E = x.shape
    H = w1t.shape[1]
    N = B * T

    out_dtype = x.dtype
    if compute_dtype is not None:
        x = x.astype(compute_dtype)      # bf16 MXU operands, f32 accumulation
    x_dtype = x.dtype

    if gelu_in_bf16 is None:
        # bf16 GELU only when activations are already bf16 (v6e/v7x VPU win;
        # keeps f32 models bit-accurate vs the reference on every generation).
        gelu_in_bf16 = (jnp.dtype(x_dtype) == jnp.dtype(jnp.bfloat16))
    gelu_dtype = jnp.bfloat16 if gelu_in_bf16 else jnp.float32

    # ---- generation-aware VMEM budget & tiles --------------------------------
    vmem_cap = _device_vmem_bytes()
    budget = int(vmem_budget_frac * vmem_cap)

    row_align = 16 if jnp.dtype(x_dtype) == jnp.dtype(jnp.bfloat16) else 8
    if block_rows is None:
        block_rows = 512 if vmem_cap >= 96 * 2**20 else 256
    tm = _pick_row_tile(N, block_rows, row_align)

    x_bytes = jnp.dtype(x_dtype).itemsize
    w_bytes = jnp.dtype(w1t.dtype).itemsize
    hk = block_hidden if block_hidden is not None else _pick_hidden_tile(
        E, H, tm, x_bytes, w_bytes, budget)
    num_h = max(1, H // hk)
    hk = H // num_h

    grid_rows = pl.cdiv(N, tm)
    n_pad = grid_rows * tm
    grid = (grid_rows, num_h)

    # ---- glue: reshape + tail-row padding only --------------------------------
    x2d = x.reshape(N, E)
    if n_pad != N:
        x2d = jnp.pad(x2d, ((0, n_pad - N), (0, 0)))

    # ---- explicit, honest VMEM limit ------------------------------------------
    n_wbuf = 1 if num_h == 1 else 2
    est = _ffn_vmem_bytes(E, hk, tm, x_bytes, w_bytes, n_wbuf)
    vmem_limit = int(min(budget, max(int(1.5 * est), 8 * 2**20)))

    # Resident (constant-index) operands are single-buffered; streamed weight
    # chunks keep the default double buffer for pipelining.
    def _weight_spec(shape, index_map):
        if num_h == 1:
            return pl.BlockSpec(shape, index_map, pipeline_mode=pl.Buffered(1))
        return pl.BlockSpec(shape, index_map)

    kernel = functools.partial(_ffn_kernel, gelu_dtype=gelu_dtype)

    out = pl.pallas_call(
        kernel,
        out_shape=jax.ShapeDtypeStruct((n_pad, E), out_dtype),
        grid=grid,
        in_specs=[
            pl.BlockSpec((tm, E), lambda i, k: (i, 0)),        # x row tile (pipelined)
            _weight_spec((E, hk), lambda i, k: (0, k)),        # W1^T chunk
            _weight_spec((1, hk), lambda i, k: (0, k)),        # b1 chunk
            _weight_spec((hk, E), lambda i, k: (k, 0)),        # W2^T chunk
            pl.BlockSpec((1, E), lambda i, k: (0, 0),          # b2 (always resident)
                         pipeline_mode=pl.Buffered(1)),
        ],
        out_specs=pl.BlockSpec((tm, E), lambda i, k: (i, 0)),
        scratch_shapes=[pltpu.VMEM((tm, E), jnp.float32)],     # f32 accumulator
        compiler_params=pltpu.CompilerParams(
            dimension_semantics=("parallel", "arbitrary"),
            vmem_limit_bytes=vmem_limit,
        ),
    )(x2d, w1t, b1, w2t, b2)

    return out[:N].reshape(B, T, E)


# ---------------------------------------------------------------------------
# Pure-JAX reference (same tanh-GELU form) for the correctness check.
# ---------------------------------------------------------------------------
def reference_feed_forward(x, w1, b1, w2, b2):
    h = x @ w1.T + b1
    h = 0.5 * h * (1.0 + jnp.tanh(_GELU_C1 * (h + 0.044715 * h ** 3)))
    return h @ w2.T + b2


# ---------------------------------------------------------------------------
if __name__ == "__main__":
    # Small shapes consistent with the module: embd_size = 32 -> hidden = 128.
    B, T, E = 2, 8, 32
    H = 4 * E

    key = jax.random.PRNGKey(0)
    k_x, k_w1, k_b1, k_w2, k_b2 = jax.random.split(key, 5)
    init = lambda k, shape, fan_in: (
        jax.random.uniform(k, shape, jnp.float32, -1.0, 1.0) / (fan_in ** 0.5))
    w1 = init(k_w1, (H, E), E)
    b1 = init(k_b1, (H,), E)
    w2 = init(k_w2, (E, H), H)
    b2 = init(k_b2, (E,), H)
    x = jax.random.normal(k_x, (B, T, E), jnp.float32)

    # One-time weight prep (hoisted out of the forward call).
    params = prepare_ffn_params(w1, b1, w2, b2)

    # Auto-tiling: N=16 rows -> tm=8, grid=(2, 1), so the row pipeline runs
    # multi-step even at this toy size; real sizes use 256/512-row tiles.
    y = pallas_feed_forward(x, params)
    y = jax.block_until_ready(y)

    y_ref = reference_feed_forward(x, w1, b1, w2, b2)
    assert y.shape == (B, T, E)
    assert jnp.allclose(y, y_ref, atol=1e-3, rtol=1e-3), "mismatch vs reference"
    print("KERNEL_OK")
</pallas_src>

<mosaic_0001>
module attributes {stable_mosaic.version = 11 : i64} {
  func.func @_ffn_kernel(%arg0: i32, %arg1: i32, %arg2: memref<8x32xf32, #tpu.memory_space<vmem>>, %arg3: memref<32x128xf32, #tpu.memory_space<vmem>>, %arg4: memref<1x128xf32, #tpu.memory_space<vmem>>, %arg5: memref<128x32xf32, #tpu.memory_space<vmem>>, %arg6: memref<1x32xf32, #tpu.memory_space<vmem>>, %arg7: memref<8x32xf32, #tpu.memory_space<vmem>>, %arg8: memref<8x32xf32, #tpu.memory_space<vmem>>) attributes {dimension_semantics = [#tpu.dimension_semantics<parallel>, #tpu.dimension_semantics<arbitrary>], iteration_bounds = array<i64: 2, 1>, scalar_prefetch = 0 : i64, scratch_operands = 1 : i64, tpu.core_type = #tpu.core_type<tc>, window_params = [{transform_indices = @transform_0, window_bounds = array<i64: 8, 32>}, {pipeline_mode = #tpu.pipeline_mode<synchronous>, transform_indices = @transform_1, window_bounds = array<i64: 32, 128>}, {pipeline_mode = #tpu.pipeline_mode<synchronous>, transform_indices = @transform_2, window_bounds = array<i64: 1, 128>}, {pipeline_mode = #tpu.pipeline_mode<synchronous>, transform_indices = @transform_3, window_bounds = array<i64: 128, 32>}, {pipeline_mode = #tpu.pipeline_mode<synchronous>, transform_indices = @transform_4, window_bounds = array<i64: 1, 32>}, {transform_indices = @transform_5, window_bounds = array<i64: 8, 32>}]} {
    %c0_i32 = arith.constant 0 : i32
    %0 = arith.cmpi eq, %arg1, %c0_i32 : i32
    %1 = arith.extui %0 : i1 to i32
    %c0_i32_0 = arith.constant 0 : i32
    %2 = arith.cmpi ne, %1, %c0_i32_0 : i32
    scf.if %2 {
      %cst_18 = arith.constant 0.000000e+00 : f32
      %28 = vector.broadcast %cst_18 : f32 to vector<8x32xf32>
      %c0_19 = arith.constant 0 : index
      %c0_20 = arith.constant 0 : index
      %29 = vector.load %arg8[%c0_19, %c0_20] : memref<8x32xf32, #tpu.memory_space<vmem>>, vector<8x32xf32>
      tpu.vector_store %arg8[%c0_19, %c0_20], %28 {strides = array<i32>} : memref<8x32xf32, #tpu.memory_space<vmem>>, vector<8x32xf32>,
    } else {
    }
    %c0 = arith.constant 0 : index
    %c0_1 = arith.constant 0 : index
    %3 = vector.load %arg2[%c0, %c0_1] : memref<8x32xf32, #tpu.memory_space<vmem>>, vector<8x32xf32>
    %c0_2 = arith.constant 0 : index
    %c0_3 = arith.constant 0 : index
    %4 = vector.load %arg3[%c0_2, %c0_3] : memref<32x128xf32, #tpu.memory_space<vmem>>, vector<32x128xf32>
    %cst = arith.constant dense<0.000000e+00> : vector<8x128xf32>
    %5 = tpu.matmul %3, %4, %cst {dimension_numbers = #tpu.dot_dimension_numbers<[1], [0], [0], [1], [0, 0, 1, 1], [], []>} : vector<8x32xf32>, vector<32x128xf32>, vector<8x128xf32> -> vector<8x128xf32>
    %c0_4 = arith.constant 0 : index
    %c0_5 = arith.constant 0 : index
    %6 = vector.load %arg4[%c0_4, %c0_5] : memref<1x128xf32, #tpu.memory_space<vmem>>, vector<1x128xf32>
    %7 = vector.broadcast %6 : vector<1x128xf32> to vector<8x128xf32>
    %8 = arith.addf %5, %7 : vector<8x128xf32>
    %9 = arith.mulf %8, %8 : vector<8x128xf32>
    %cst_6 = arith.constant 0.0356774069 : f32
    %10 = vector.broadcast %cst_6 : f32 to vector<8x128xf32>
    %11 = arith.mulf %10, %9 : vector<8x128xf32>
    %cst_7 = arith.constant 0.797884583 : f32
    %12 = vector.broadcast %cst_7 : f32 to vector<8x128xf32>
    %13 = arith.addf %12, %11 : vector<8x128xf32>
    %14 = arith.mulf %8, %13 : vector<8x128xf32>
    %cst_8 = arith.constant 5.000000e-01 : f32
    %15 = vector.broadcast %cst_8 : f32 to vector<8x128xf32>
    %16 = arith.mulf %15, %8 : vector<8x128xf32>
    %17 = math.tanh %14 : vector<8x128xf32>
    %18 = arith.mulf %16, %17 : vector<8x128xf32>
    %19 = arith.addf %16, %18 : vector<8x128xf32>
    %c0_9 = arith.constant 0 : index
    %c0_10 = arith.constant 0 : index
    %20 = vector.load %arg8[%c0_9, %c0_10] : memref<8x32xf32, #tpu.memory_space<vmem>>, vector<8x32xf32>
    %c0_11 = arith.constant 0 : index
    %c0_12 = arith.constant 0 : index
    %21 = vector.load %arg5[%c0_11, %c0_12] : memref<128x32xf32, #tpu.memory_space<vmem>>, vector<128x32xf32>
    %cst_13 = arith.constant dense<0.000000e+00> : vector<8x32xf32>
    %22 = tpu.matmul %19, %21, %cst_13 {dimension_numbers = #tpu.dot_dimension_numbers<[1], [0], [0], [1], [0, 0, 1, 1], [], []>} : vector<8x128xf32>, vector<128x32xf32>, vector<8x32xf32> -> vector<8x32xf32>
    %23 = arith.addf %20, %22 : vector<8x32xf32>
    %c0_14 = arith.constant 0 : index
    %c0_15 = arith.constant 0 : index
    %24 = vector.load %arg8[%c0_14, %c0_15] : memref<8x32xf32, #tpu.memory_space<vmem>>, vector<8x32xf32>
    tpu.vector_store %arg8[%c0_14, %c0_15], %23 {strides = array<i32>} : memref<8x32xf32, #tpu.memory_space<vmem>>, vector<8x32xf32>,
    %c0_i32_16 = arith.constant 0 : i32
    %25 = arith.cmpi eq, %arg1, %c0_i32_16 : i32
    %26 = arith.extui %25 : i1 to i32
    %c0_i32_17 = arith.constant 0 : i32
    %27 = arith.cmpi ne, %26, %c0_i32_17 : i32
    scf.if %27 {
      %c0_18 = arith.constant 0 : index
      %c0_19 = arith.constant 0 : index
      %28 = vector.load %arg8[%c0_18, %c0_19] : memref<8x32xf32, #tpu.memory_space<vmem>>, vector<8x32xf32>
      %c0_20 = arith.constant 0 : index
      %c0_21 = arith.constant 0 : index
      %29 = vector.load %arg6[%c0_20, %c0_21] : memref<1x32xf32, #tpu.memory_space<vmem>>, vector<1x32xf32>
      %30 = vector.broadcast %29 : vector<1x32xf32> to vector<8x32xf32>
      %31 = arith.addf %28, %30 : vector<8x32xf32>
      %c0_22 = arith.constant 0 : index
      %c0_23 = arith.constant 0 : index
      %32 = vector.load %arg7[%c0_22, %c0_23] : memref<8x32xf32, #tpu.memory_space<vmem>>, vector<8x32xf32>
      tpu.vector_store %arg7[%c0_22, %c0_23], %31 {strides = array<i32>} : memref<8x32xf32, #tpu.memory_space<vmem>>, vector<8x32xf32>,
    } else {
    }
    return
  }
  func.func @transform_0(%arg0: i32, %arg1: i32) -> (i32, i32) {
    %c0_i32 = arith.constant 0 : i32
    %c0_i32_0 = arith.constant 0 : i32
    return %arg0, %c0_i32 : i32, i32
  }
  func.func @transform_1(%arg0: i32, %arg1: i32) -> (i32, i32) {
    %c0_i32 = arith.constant 0 : i32
    %c0_i32_0 = arith.constant 0 : i32
    return %c0_i32, %arg1 : i32, i32
  }
  func.func @transform_2(%arg0: i32, %arg1: i32) -> (i32, i32) {
    %c0_i32 = arith.constant 0 : i32
    %c0_i32_0 = arith.constant 0 : i32
    return %c0_i32, %arg1 : i32, i32
  }
  func.func @transform_3(%arg0: i32, %arg1: i32) -> (i32, i32) {
    %c0_i32 = arith.constant 0 : i32
    %c0_i32_0 = arith.constant 0 : i32
    return %arg1, %c0_i32 : i32, i32
  }
  func.func @transform_4(%arg0: i32, %arg1: i32) -> (i32, i32) {
    %c0_i32 = arith.constant 0 : i32
    %c0_i32_0 = arith.constant 0 : i32
    %c0_i32_1 = arith.constant 0 : i32
    return %c0_i32, %c0_i32_0 : i32, i32
  }
  func.func @transform_5(%arg0: i32, %arg1: i32) -> (i32, i32) {
    %c0_i32 = arith.constant 0 : i32
    %c0_i32_0 = arith.constant 0 : i32
    return %arg0, %c0_i32 : i32, i32
  }
}

</mosaic_0001>

<bundles_post_ra>
// kernel: tpu_custom_call.1
= control target key start
LH: loop header
LB: loop body
LE: loop exit
PB: predicated region body
PF: predicated region fallthrough
CT: control target
= control target key end

     0   :  { %10 = vsyncpa [#allocation4], 0  ;;  %s1081_s0 = inlined_call_operand.vmem [shape: f32[16,32], index: 0, kind: input, shape index: {}]   ;;  %s1082_s1 = inlined_call_operand.vmem [shape: f32[32,128], index: 1, kind: input, shape index: {}]   ;;  %s1083_s2 = inlined_call_operand.vmem [shape: f32[1,128], index: 2, kind: input, shape index: {}]   ;;  %s1084_s3 = inlined_call_operand.vmem [shape: f32[128,32], index: 3, kind: input, shape index: {}]   ;;  %s1085_s4 = inlined_call_operand.vmem [shape: f32[1,32], index: 4, kind: input, shape index: {}]   ;;  %s1086_s5 = inlined_call_operand.hbm [shape: f32[16,32], index: 5, kind: output, shape index: {}]  }
   0x1   :  { %12 = vsyncpa [#allocation4 + $0x1], 0  ;;  %s899_s18 = smov 0   ;;  %s901_s19 = smov 0  }
   0x2   :  { %s903_s20 = smov 0   ;;  %s905_s21 = smov 0  }
   0x3   :  { %s907_s22 = smov 0   ;;  %s909_s23 = smov 0  }
   0x4 LB: > { %s610_s24 = sadd.s32 4294967295, %s863_s23   ;;  %s611_s25 = sadd.s32 4294967294, %s863_s23   ;;  %s863_s23 = sphi %s909_s23, %s18_s23   ;;  %s859_s22 = sphi %s907_s22, %s1093_s22   ;;  %s855_s21 = sphi %s905_s21, %s1092_s21   ;;  %s851_s20 = sphi %s903_s20, %s1091_s20   ;;  %s847_s19 = sphi %s901_s19, %s1090_s19   ;;  %s843_s18 = sphi %s899_s18, %s1089_s18  }
   0x5   : > { %s30_s26 = sadd.s32 1, %s859_s22  ;;  %s162_s27 = sadd.s32 1, %s851_s20 }
   0x6   : > { %p32_p0 = scmp.ge.s32.totalorder %s30_s26, 2  ;;  %p172_p1 = scmp.ne.s32.totalorder %s851_s20, %s847_s19 }
   0x7   : > { %p173_p2 = scmp.eq.s32.totalorder %s610_s24, 1  ;;  %p178_p3 = scmp.ne.s32.totalorder %s847_s19, %s843_s18 }
   0x8   : > { %s1095_s26 = smov (%p32_p0, %s30_s26), 0  ;;  %p179_p5 = scmp.eq.s32.totalorder %s611_s25, 1 }
   0x9   : > { %p939_p4 = por %p173_p2, %p172_p1  ;;  %s159_s29 = ssub.s32 %s859_s22, %s1095_s26 }
   0xa   : > { %p617_p6 = scmp.ge.s32.totalorder %s863_s23, 1  ;;  %p160_p7 = scmp.eq.s32.totalorder %s159_s29, 0 }
   0xb   : > { %p946_p8 = por %p179_p5, %p178_p3  ;;  %p229_p9 = scmp.lt.s32.totalorder %s863_s23, 3 }
   0xc   : > { %s952_s6 = scalar_select %p160_p7, %s851_s20, %s162_s27  }
   0xd   : > { %p230_p10 = pnand %p617_p6, %p229_p9 }
   0xe   : > { %v292_v0 = vld [vmem:[%s1082_s1] sm:$0xff] (!%p230_p10)  ;;  %v293_v1 = vld [vmem:[%s1082_s1 + $0x8] sm:$0xff] (!%p230_p10)  ;;  %v294_v2 = vld [vmem:[%s1082_s1 + $0x10] sm:$0xff] (!%p230_p10)  ;;  %v865_v3 = vmov (!%p230_p10), 0.0|0.0   ;;  %vm866_vm0 = vmmov (!%p230_p10), 0   ;;  %v867_v6 = vmov (!%p230_p10), 0.0  }
   0xf   : > { %233 = sbr.rel (%p230_p10) target bundleno = 502 (0x1f6), region = 40  ;;  %695 = vmatprep.subr.bf16.mxu0 (!%p230_p10), %v865_v3  ;;  %v696_v4 = vpack.c.bf16 (!%p230_p10), %v293_v1, %v292_v0  ;;  %v295_v5 = vld [vmem:[%s1082_s1 + $0x18] sm:$0xff] (!%p230_p10)  ;;  %657 = vmatprep.mubr.msk.f32.mxu0 (!%p230_p10), %vm866_vm0, %v867_v6  ;;  %p268_p11 = scmp.lt.s32.totalorder (!%p230_p10), %s855_s21, 1  ;;  %vm289_vm1 = vcmask (!%p230_p10), 261120   ;;  %v386_v7 = vld [vmem:[%s1084_s3] sm:$0xff] (!%p230_p10)  ;;  %v387_v8 = vld [vmem:[%s1084_s3 + $0x8] sm:$0xff] (!%p230_p10) }
  0x10   : > { %290 = vst.msk [vmem:[#allocation2] sm:$0xff] (!%p230_p10), %vm289_vm1, %v867_v6  ;;  %701 = vmatprep.subr.bf16.mxu1 (!%p230_p10), %v865_v3  ;;  %v702_v9 = vpack.c.bf16 (!%p230_p10), %v387_v8, %v386_v7  ;;  %v388_v10 = vld [vmem:[%s1084_s3 + $0x10] sm:$0xff] (!%p230_p10)  ;;  %v389_v11 = vld [vmem:[%s1084_s3 + $0x18] sm:$0xff] (!%p230_p10)  ;;  %692 = vmatprep.mubr.msk.f32.mxu1 (!%p230_p10), %vm866_vm0, %v867_v6  ;;  %v699_v12 = vpack.c.bf16 (!%p230_p10), %v295_v5, %v294_v2  ;;  %v390_v15 = vld [vmem:[%s1084_s3 + $0x20] sm:$0xff] (!%p230_p10)  ;;  %s624_s13 = sshll.u32 (!%p230_p10), %s855_s21, 7 }
  0x11   : > { %697 = vmatpush3.bf16.msra.mxu0 (!%p230_p10), %v696_v4  ;;  %v705_v13 = vpack.c.bf16 (!%p230_p10), %v389_v11, %v388_v10  ;;  %v391_v16 = vld [vmem:[%s1084_s3 + $0x28] sm:$0xff] (!%p230_p10)  ;;  %v392_v18 = vld [vmem:[%s1084_s3 + $0x30] sm:$0xff] (!%p230_p10)  ;;  %v393_v19 = vld [vmem:[%s1084_s3 + $0x38] sm:$0xff] (!%p230_p10)  ;;  %s1033_s24 = scalar_lea.hbm (!%p230_p10), %s1086_s5, %s624_s13 }
  0x12   : > { %698 = vmatprep.subr.bf16.mxu0 (!%p230_p10), %v865_v3  ;;  %703 = vmatpush3.bf16.msra.mxu1 (!%p230_p10), %v702_v9  ;;  %v708_v17 = vpack.c.bf16 (!%p230_p10), %v391_v16, %v390_v15  ;;  %v711_v20 = vpack.c.bf16 (!%p230_p10), %v393_v19, %v392_v18  ;;  %v394_v21 = vld [vmem:[%s1084_s3 + $0x40] sm:$0xff] (!%p230_p10)  ;;  %v395_v22 = vld [vmem:[%s1084_s3 + $0x48] sm:$0xff] (!%p230_p10)  ;;  %v396_v24 = vld [vmem:[%s1084_s3 + $0x50] sm:$0xff] (!%p230_p10) }
  0x13   : > { %704 = vmatprep.subr.bf16.mxu1 (!%p230_p10), %v865_v3  ;;  %v714_v23 = vpack.c.bf16 (!%p230_p10), %v395_v22, %v394_v21  ;;  %v397_v25 = vld [vmem:[%s1084_s3 + $0x58] sm:$0xff] (!%p230_p10)  ;;  %v398_v27 = vld [vmem:[%s1084_s3 + $0x60] sm:$0xff] (!%p230_p10)  ;;  %v399_v28 = vld [vmem:[%s1084_s3 + $0x68] sm:$0xff] (!%p230_p10) }
  0x14   : > { %v717_v26 = vpack.c.bf16 (!%p230_p10), %v397_v25, %v396_v24  ;;  %v720_v29 = vpack.c.bf16 (!%p230_p10), %v399_v28, %v398_v27  ;;  %v400_v30 = vld [vmem:[%s1084_s3 + $0x70] sm:$0xff] (!%p230_p10)  ;;  %v401_v31 = vld [vmem:[%s1084_s3 + $0x78] sm:$0xff] (!%p230_p10)  ;;  %v620_v33 = vld [vmem:[%s1083_s2] ss:$0 sm:$0xff] (!%p230_p10) }
  0x15   : > { %700 = vmatpush3.bf16.msra.mxu0 (!%p230_p10), %v699_v12  ;;  %v723_v32 = vpack.c.bf16 (!%p230_p10), %v401_v31, %v400_v30  ;;  %v622_v49 = vld [vmem:[%s1085_s4] ss:$0 sm:$0xff] (!%p230_p10) }
  0x16   : > { %s269_s8 = scalar_select %p268_p11, %s855_s21, 1  ;;  %706 = vmatpush3.bf16.msra.mxu1 %v705_v13 }
  0x17   : > { %707 = vmatprep.subr.bf16.mxu1 %v865_v3  ;;  %v385_v45 = vld [vmem:[#allocation2] sm:$0xff]  ;;  %s868_s21 = smov [#allocation3]  }
  0x18   : > { %s619_s9 = sshll.u32 %s269_s8, 3  ;;  %s789_s29 = sshll.u32 %s868_s21, 4  ;;  %s790_s29 = int_to_ptr.vmem [resolvable:$false] %s789_s29 }
  0x19   : > { %s271_s12 = scalar_lea.vmem %s1081_s0, %s619_s9  ;;  %s265_s9 = sand.u32 1, %s847_s19  }
  0x1a   : > { %v291_v14 = vld [vmem:[%s271_s12] sm:$0xff]  ;;  %709 = vmatpush3.bf16.msra.mxu1 %v708_v17  ;;  %s618_s10 = sshll.u32 %s265_s9, 3  ;;  %s488_s25 = scalar_lea.sflag [#allocation4], %s265_s9 }
  0x1b   : > { %658 = vmatmul.mubr.msk.f32.vlgmr.msra.gmra.mrb[0].mxu0 %vm289_vm1, %v291_v14  ;;  %710 = vmatprep.subr.bf16.mxu1 %v865_v3  ;;  %s267_s14 = scalar_lea.vmem [#allocation3], %s618_s10  ;;  %s791_s7 = scalar_lea.vmem %s790_s29, 256 }
  0x1c   : > { %s501_s15 = sshll.u32 %s267_s14, 4  ;;  %s1035_s15 = int_to_ptr.vmem [resolvable:$true] %s501_s15 }
  0x1d   : > { %s785_s27 = scalar_lea.vmem %s1035_s15, 128  ;;  %p792_p1 = scmp.lt.s32.totalorder %s1035_s15, %s790_s29 }
  0x1e   : > { %712 = vmatpush3.bf16.msra.mxu1 %v711_v20  ;;  %p786_p12 = scmp.ne.s32.totalorder %s1035_s15, %s785_s27  ;;  %p793_p2 = scmp.lt.s32.totalorder %s791_s7, %s785_s27 }
  0x1f   : > { %713 = vmatprep.subr.bf16.mxu1 %v865_v3 }
  0x20   : > { %p787_p13 = pnand %p786_p12, %p939_p4  ;;  %p794_p3 = por %p793_p2, %p792_p1 }
  0x22   : > { %715 = vmatpush3.bf16.msra.mxu1 %v714_v23  ;;  %p788_p0 = pneg %p787_p13 }
  0x23   : > { %716 = vmatprep.subr.bf16.mxu1 %v865_v3 }
  0x24   : > { %p795_p5 = pnand %p794_p3, %p788_p0 }
  0x26   : > { %718 = vmatpush3.bf16.msra.mxu1 %v717_v26 }
  0x27   : > { %719 = vmatprep.subr.bf16.mxu1 %v865_v3 }
  0x2a   : > { %721 = vmatpush3.bf16.msra.mxu1 %v720_v29 }
  0x2b   : > { %722 = vmatprep.subr.bf16.mxu1 %v865_v3 }
  0x2e   : > { %724 = vmatpush3.bf16.msra.mxu1 %v723_v32 }
  0xee   : > { %v373_v34 = vpop.f32.mrb[0].mxu0 }
  0xef   : > { %v374_v35 = vadd.f32 %v620_v33, %v373_v34  ;;  %v659_v36 = vpop.f32.mrb[1].mxu0 }
  0xf1   : > { %v377_v37 = vmul.f32 %v374_v35, %v374_v35  ;;  %v381_v41 = vmul.f32 0.5, %v374_v35 }
  0xf3   : > { %v378_v38 = vmul.f32 0.035677407, %v377_v37 }
  0xf5   : > { %v379_v39 = vadd.f32 0.7978846, %v378_v38 }
  0xf7   : > { %v380_v40 = vmul.f32 %v379_v39, %v374_v35 }
  0xf9   : > { %783 = vtanh.f32 %v380_v40 }
 0x103   : > { %v784_v42 = vpop.eup %783 }
 0x104   : > { %v383_v43 = vmul.f32 %v784_v42, %v381_v41 }
 0x106   : > { %v384_v44 = vadd.f32 %v383_v43, %v381_v41 }
 0x108   : > { %693 = vmatmul.mubr.f32.vlgmr.msra.gmra.mrb[0].mxu1 %v384_v44 }
 0x1db   : > { %v468_v46 = vpop.f32.mrb[0].mxu1 }
 0x1dc   : > { %v472_v47 = vadd.f32 %v468_v46, %v385_v45  ;;  %v694_v48 = vpop.f32.mrb[1].mxu1 }
 0x1de   : > { %473 = vst.msk [vmem:[#allocation2] sm:$0xff] %vm289_vm1, %v472_v47 }
 0x1e5   : > { %v477_v50 = vld [vmem:[#allocation2] sm:$0xff] }
 0x1e6   : > { %v485_v51 = vadd.f32 %v622_v49, %v477_v50 }
 0x1e8   : > { %486 = vst.msk [vmem:[%s267_s14] sm:$0xff] %vm289_vm1, %v485_v51 }
 0x1e9   : > { %798 = shalt.err (!%p795_p5)
}
 0x1ea   : > { %s799_s8 = scalar_lea.hbm %s1033_s24, 128  ;;  %s803_s11 = scalar_lea.hbm %s1086_s5, 256 }
 0x1eb   : > { %p800_p6 = scmp.ne.s32.totalorder %s1033_s24, %s799_s8  ;;  %p804_p10 = scmp.lt.u32.totalorder %s1033_s24, %s1086_s5 }
 0x1ec   : > { %p805_p11 = scmp.lt.u32.totalorder %s803_s11, %s799_s8  ;;  %p807_p13 = scmp.lt.u32.totalorder %s799_s8, %s1033_s24 }
 0x1ed   : > { %p801_p7 = pnand %p800_p6, %p939_p4 }
 0x1ee   : > { %p806_p12 = por %p805_p11, %p804_p10 }
 0x1ef   : > { %p802_p9 = pneg %p801_p7 }
 0x1f0   : > { %p808_p0 = por %p807_p13, %p806_p12 }
 0x1f2   : > { %p809_p1 = pnand %p808_p0, %p802_p9 }
 0x1f4   : > { %812 = shalt.err (!%p809_p1)
}
 0x1f5   : > { %725 = dma.vmem_to_hbm [thread:$0]  (%p939_p4), %s1035_s15, 128, %s1033_s24, %s488_s25  }
 0x1f6 PF: > { %p731_p2 = scmp.ge.s32.totalorder %s863_s23, 2  ;;  %s513_s14 = sand.u32 1, %s843_s18  }
 0x1f7   : > { %s514_s16 = scalar_lea.sflag [#allocation4], %s513_s14 }
 0x1f8   : > { %p728_p3 = pnand %p731_p2, %p946_p8 }
 0x1fa   : > { %838 = dma.done.wait (!%p728_p3), %s514_s16, 128  }
 0x1fb   : > { %840 = vsyncadd (!%p728_p3), %s514_s16, 4294967168  ;;  %s18_s23 = sadd.s32 1, %s863_s23   ;;  %s1089_s18 = smov %s847_s19 }
 0x1fc   : > { %p15_p5 = scmp.ge.s32.totalorder %s18_s23, 4   ;;  %s1090_s19 = smov %s851_s20 }
 0x1fd   : > { %s1091_s20 = smov %s952_s6  ;;  %s1092_s21 = smov %s859_s22 }
 0x1fe   : > { %s1093_s22 = smov %s1095_s26  ;;  %17 = sbr.rel (!%p15_p5) target bundleno = 4 (0x4), region = 92 }
 0x205   :  { %519 = vsyncpa [#allocation4], 1 }
 0x206   :  { %521 = vsyncpa [#allocation4 + $0x1], 1 }

</bundles_post_ra>
